<compile_context>
chip_gen: v7x
topology: tpu7x:2x2x1
jax: 0.10.0
libtpu: 0.0.40
codegen_flags: <defaults>
</compile_context>

<pallas_src>
import numpy as np
import jax
import jax.numpy as jnp
from jax.experimental import pallas as pl


# ---------------------------------------------------------------------------
# Settings (synthetic, small)
# ---------------------------------------------------------------------------
LATENT_DIM = 16
NUM_LABELS = 8
NUM_CHANNEL = 32
NUM_LAYERS = 3           # conv channels: 32 -> 16 -> 8 -> 1
BATCH = 16
TILE_B = BATCH           # single grid step; re-tile only when B is large (see notes)
LEAKY_SLOPE = 0.01       # PyTorch nn.LeakyReLU default

D_IN = LATENT_DIM + NUM_LABELS   # 24
C0 = NUM_CHANNEL                 # 32  (linear out / conv0 in)
C1 = NUM_CHANNEL // 2            # 16  (conv0 out / conv1 in)
C2 = NUM_CHANNEL // 4            # 8   (conv1 out / conv2 in)

# ---------------------------------------------------------------------------
# Packed parameter slab layout: one f32 array of shape (SLAB_ROWS, C1).
# Every block starts on a sublane multiple of 8; unused lanes/rows hold exact
# zeros, so padded entries stay zero through LeakyReLU and contribute nothing.
# ---------------------------------------------------------------------------
ROW_WZ = 0                       # (LATENT_DIM, C1)  folded weight, z part
ROW_WY = 16                      # (NUM_LABELS, C1)  folded weight, y part
ROW_BF = 24                      # (1, C1)           folded bias
ROW_W1 = 32                      # (C1, C1)          conv1 weight, cols >= C2 zero
ROW_B1 = 48                      # (1, C1)           conv1 bias,   lanes >= C2 zero
ROW_W2 = 56                      # (C1, 1)           conv2 weight COLUMN (lane 0), rows >= C2 zero
ROW_B2 = 72                      # (1, 1)            conv2 bias (lane 0)
SLAB_ROWS = 80
# TODO(synk): slab could be widened to 128 lanes to avoid masked 16-lane reads;
# at 5 KB total it is noise, so the narrow layout is kept for simplicity.


# ---------------------------------------------------------------------------
# Pallas kernel: the entire decoder hot path for one batch tile
# ---------------------------------------------------------------------------
def decoder_kernel(z_ref, y_ref, p_ref, o_ref):
    z = z_ref[...]                                    # (TILE_B, LATENT_DIM)
    y = y_ref[...]                                    # (TILE_B, NUM_LABELS)

    # --- fused Linear + conv0 (folded at param-prep time; algebraically exact) --
    wz = p_ref[ROW_WZ:ROW_WZ + LATENT_DIM, :]         # (16, 16)
    wy = p_ref[ROW_WY:ROW_WY + NUM_LABELS, :]         # (8, 16)
    bf = p_ref[ROW_BF:ROW_BF + 1, :]                  # (1, 16)
    h = (jnp.dot(z, wz, preferred_element_type=jnp.float32)
         + jnp.dot(y, wy, preferred_element_type=jnp.float32)
         + bf)                                        # (TILE_B, C1)
    h = jnp.where(h > 0, h, LEAKY_SLOPE * h)          # LeakyReLU (after conv0)

    # --- conv1 (C1 -> C2) as one MXU dot (shortest chain; MRB-friendly on v7x) --
    w1 = p_ref[ROW_W1:ROW_W1 + C1, :]                 # (16, 16), cols >= C2 zero
    b1 = p_ref[ROW_B1:ROW_B1 + 1, :]                  # (1, 16),  lanes >= C2 zero
    h1 = jnp.dot(h, w1, preferred_element_type=jnp.float32) + b1
    h1 = jnp.where(h1 > 0, h1, LEAKY_SLOPE * h1)      # (TILE_B, 16), lanes >= C2 zero

    # --- conv2 (C2 -> 1), produced lane-dense: transpose once (XLU), multiply by
    # the weight column, reduce over sublanes -> result is a (1, TILE_B) row.
    h1t = h1.T                                        # (C1, TILE_B)
    w2c = p_ref[ROW_W2:ROW_W2 + C1, 0:1]              # (C1, 1), rows >= C2 zero
    b2 = p_ref[ROW_B2:ROW_B2 + 1, 0:1]                # (1, 1)
    h2 = jnp.sum(h1t * w2c, axis=0, keepdims=True) + b2   # (1, TILE_B)
    h2 = jnp.where(h2 > 0, h2, LEAKY_SLOPE * h2)      # LeakyReLU (after conv2)

    # --- Sigmoid via a single EUP tanh: sigma(x) = 0.5 + 0.5*tanh(x/2) ----------
    o_ref[...] = 0.5 + 0.5 * jnp.tanh(0.5 * h2)       # (1, TILE_B) row store


# ---------------------------------------------------------------------------
# Wrapper: single-step pallas_call (plain grid/in_specs/out_specs)
# ---------------------------------------------------------------------------
@jax.jit
def decoder_forward(z, y, slab):
    B = z.shape[0]
    assert B % TILE_B == 0, "demo requires BATCH % TILE_B == 0"
    out_row = pl.pallas_call(
        decoder_kernel,
        out_shape=jax.ShapeDtypeStruct((1, B), jnp.float32),  # lane-dense output
        grid=(B // TILE_B,),
        in_specs=[
            pl.BlockSpec((TILE_B, LATENT_DIM), lambda i: (i, 0)),
            pl.BlockSpec((TILE_B, NUM_LABELS), lambda i: (i, 0)),
            # whole parameter slab: one DMA, resident across the batch axis
            pl.BlockSpec((SLAB_ROWS, C1), lambda i: (0, 0)),
        ],
        out_specs=pl.BlockSpec((1, TILE_B), lambda i: (0, i)),
    )(z, y, slab)
    # reshape (1, B) -> (B, 1) in the wrapper (same flat order: free)
    return out_row.reshape(B, 1)


# ---------------------------------------------------------------------------
# Deterministic PyTorch-equivalent parameters (synthetic, not a checkpoint)
# ---------------------------------------------------------------------------
def init_params(key):
    dims = [C0]
    for i in range(NUM_LAYERS):
        out_c = int(NUM_CHANNEL / 2 ** (i + 1))
        if i == NUM_LAYERS - 1:
            out_c = 1
        dims.append(out_c)

    keys = jax.random.split(key, 2 * (NUM_LAYERS + 1))
    params = {
        # Linear stored as (in, out) for right-multiplication
        "wl": 0.1 * jax.random.normal(keys[0], (D_IN, C0), jnp.float32),
        "bl": 0.1 * jax.random.normal(keys[1], (1, C0), jnp.float32),
    }
    # ConvTranspose1d layers: weight (in_ch, out_ch, 1) squeezed to (in_ch, out_ch)
    for i in range(NUM_LAYERS):
        params[f"w{i}"] = 0.1 * jax.random.normal(
            keys[2 + 2 * i], (dims[i], dims[i + 1]), jnp.float32)
        params[f"b{i}"] = 0.1 * jax.random.normal(
            keys[3 + 2 * i], (1, dims[i + 1]), jnp.float32)
    return params


def pack_params(p):
    """One-time param prep: fold Linear+conv0 (exact; done in f64 for robustness)
    and pack everything into a single (SLAB_ROWS, C1) f32 slab addressed by
    static slices in the kernel."""
    wl = np.asarray(p["wl"], np.float64)
    bl = np.asarray(p["bl"], np.float64)
    w0 = np.asarray(p["w0"], np.float64)
    b0 = np.asarray(p["b0"], np.float64)
    wf = jnp.asarray(wl @ w0, jnp.float32)                 # (D_IN, C1)
    bf = jnp.asarray(bl @ w0 + b0, jnp.float32)            # (1, C1)

    slab = jnp.zeros((SLAB_ROWS, C1), jnp.float32)
    slab = slab.at[ROW_WZ:ROW_WZ + LATENT_DIM, :].set(wf[:LATENT_DIM])
    slab = slab.at[ROW_WY:ROW_WY + NUM_LABELS, :].set(wf[LATENT_DIM:])
    slab = slab.at[ROW_BF, :].set(bf[0])
    slab = slab.at[ROW_W1:ROW_W1 + C1, :C2].set(p["w1"])   # (16, 8)
    slab = slab.at[ROW_B1, :C2].set(p["b1"][0])            # (8,)
    slab = slab.at[ROW_W2:ROW_W2 + C2, 0].set(p["w2"][:, 0])   # column, lane 0
    slab = slab.at[ROW_B2, 0].set(p["b2"][0, 0])           # scalar, lane 0
    return slab


# Pure-JAX reference of the UNFOLDED module (validates the fold + kernel)
def decoder_reference(z, y, params):
    x = jnp.concatenate([z, y], axis=1).astype(jnp.float32)
    h = x @ params["wl"] + params["bl"]
    for i in range(NUM_LAYERS):
        h = h @ params[f"w{i}"] + params[f"b{i}"]
        h = jnp.where(h > 0, h, LEAKY_SLOPE * h)
    return (1.0 / (1.0 + jnp.exp(-h))).reshape(-1, 1)


if __name__ == "__main__":
    key = jax.random.PRNGKey(0)
    kz, ky, kp = jax.random.split(key, 3)

    z = jax.random.normal(kz, (BATCH, LATENT_DIM), jnp.float32)
    y = jax.random.normal(ky, (BATCH, NUM_LABELS), jnp.float32)

    params = init_params(kp)        # PyTorch-equivalent (unfolded) parameters
    slab = pack_params(params)      # one-time fold + pack (outside the jit)

    out = jax.block_until_ready(decoder_forward(z, y, slab))
    ref = decoder_reference(z, y, params)

    assert out.shape == (BATCH, 1), out.shape
    assert jnp.allclose(out, ref, atol=1e-5, rtol=1e-5), (out, ref)

    print("KERNEL_OK")
</pallas_src>

<mosaic_0001>
module attributes {stable_mosaic.version = 11 : i64} {
  func.func @decoder_kernel(%arg0: i32, %arg1: memref<16x16xf32, #tpu.memory_space<vmem>>, %arg2: memref<16x8xf32, #tpu.memory_space<vmem>>, %arg3: memref<80x16xf32, #tpu.memory_space<vmem>>, %arg4: memref<1x16xf32, #tpu.memory_space<vmem>>) attributes {dimension_semantics = [#tpu.dimension_semantics<arbitrary>], iteration_bounds = array<i64: 1>, scalar_prefetch = 0 : i64, scratch_operands = 0 : i64, tpu.core_type = #tpu.core_type<tc>, window_params = [{transform_indices = @transform_0, window_bounds = array<i64: 16, 16>}, {transform_indices = @transform_1, window_bounds = array<i64: 16, 8>}, {pipeline_mode = #tpu.pipeline_mode<synchronous>, transform_indices = @transform_2, window_bounds = array<i64: 80, 16>}, {transform_indices = @transform_3, window_bounds = array<i64: 1, 16>}]} {
    %c0 = arith.constant 0 : index
    %c0_0 = arith.constant 0 : index
    %0 = vector.load %arg1[%c0, %c0_0] : memref<16x16xf32, #tpu.memory_space<vmem>>, vector<16x16xf32>
    %c0_1 = arith.constant 0 : index
    %c0_2 = arith.constant 0 : index
    %1 = vector.load %arg2[%c0_1, %c0_2] : memref<16x8xf32, #tpu.memory_space<vmem>>, vector<16x8xf32>
    %c0_3 = arith.constant 0 : index
    %c0_4 = arith.constant 0 : index
    %2 = vector.load %arg3[%c0_3, %c0_4] : memref<80x16xf32, #tpu.memory_space<vmem>>, vector<16x16xf32>
    %c16 = arith.constant 16 : index
    %c0_5 = arith.constant 0 : index
    %3 = vector.load %arg3[%c16, %c0_5] : memref<80x16xf32, #tpu.memory_space<vmem>>, vector<8x16xf32>
    %c24 = arith.constant 24 : index
    %c0_6 = arith.constant 0 : index
    %4 = vector.load %arg3[%c24, %c0_6] : memref<80x16xf32, #tpu.memory_space<vmem>>, vector<1x16xf32>
    %cst = arith.constant dense<0.000000e+00> : vector<16x16xf32>
    %5 = tpu.matmul %0, %2, %cst {dimension_numbers = #tpu.dot_dimension_numbers<[1], [0], [0], [1], [0, 0, 1, 1], [], []>} : vector<16x16xf32>, vector<16x16xf32>, vector<16x16xf32> -> vector<16x16xf32>
    %cst_7 = arith.constant dense<0.000000e+00> : vector<16x16xf32>
    %6 = tpu.matmul %1, %3, %cst_7 {dimension_numbers = #tpu.dot_dimension_numbers<[1], [0], [0], [1], [0, 0, 1, 1], [], []>} : vector<16x8xf32>, vector<8x16xf32>, vector<16x16xf32> -> vector<16x16xf32>
    %7 = arith.addf %5, %6 : vector<16x16xf32>
    %8 = vector.broadcast %4 : vector<1x16xf32> to vector<16x16xf32>
    %9 = arith.addf %7, %8 : vector<16x16xf32>
    %cst_8 = arith.constant 0.000000e+00 : f32
    %10 = vector.broadcast %cst_8 : f32 to vector<16x16xf32>
    %11 = arith.cmpf ogt, %9, %10 : vector<16x16xf32>
    %cst_9 = arith.constant 0.00999999977 : f32
    %12 = vector.broadcast %cst_9 : f32 to vector<16x16xf32>
    %13 = arith.mulf %12, %9 : vector<16x16xf32>
    %14 = arith.select %11, %9, %13 : vector<16x16xi1>, vector<16x16xf32>
    %c32 = arith.constant 32 : index
    %c0_10 = arith.constant 0 : index
    %15 = vector.load %arg3[%c32, %c0_10] : memref<80x16xf32, #tpu.memory_space<vmem>>, vector<16x16xf32>
    %c48 = arith.constant 48 : index
    %c0_11 = arith.constant 0 : index
    %16 = vector.load %arg3[%c48, %c0_11] : memref<80x16xf32, #tpu.memory_space<vmem>>, vector<1x16xf32>
    %cst_12 = arith.constant dense<0.000000e+00> : vector<16x16xf32>
    %17 = tpu.matmul %14, %15, %cst_12 {dimension_numbers = #tpu.dot_dimension_numbers<[1], [0], [0], [1], [0, 0, 1, 1], [], []>} : vector<16x16xf32>, vector<16x16xf32>, vector<16x16xf32> -> vector<16x16xf32>
    %18 = vector.broadcast %16 : vector<1x16xf32> to vector<16x16xf32>
    %19 = arith.addf %17, %18 : vector<16x16xf32>
    %cst_13 = arith.constant 0.000000e+00 : f32
    %20 = vector.broadcast %cst_13 : f32 to vector<16x16xf32>
    %21 = arith.cmpf ogt, %19, %20 : vector<16x16xf32>
    %cst_14 = arith.constant 0.00999999977 : f32
    %22 = vector.broadcast %cst_14 : f32 to vector<16x16xf32>
    %23 = arith.mulf %22, %19 : vector<16x16xf32>
    %24 = arith.select %21, %19, %23 : vector<16x16xi1>, vector<16x16xf32>
    %25 = tpu.transpose %24, [1, 0] : vector<16x16xf32> -> vector<16x16xf32>
    %c56 = arith.constant 56 : index
    %c0_15 = arith.constant 0 : index
    %26 = vector.load %arg3[%c56, %c0_15] : memref<80x16xf32, #tpu.memory_space<vmem>>, vector<16x1xf32>
    %c72 = arith.constant 72 : index
    %c0_16 = arith.constant 0 : index
    %27 = vector.load %arg3[%c72, %c0_16] : memref<80x16xf32, #tpu.memory_space<vmem>>, vector<1x1xf32>
    %28 = vector.broadcast %26 : vector<16x1xf32> to vector<16x16xf32>
    %29 = arith.mulf %25, %28 : vector<16x16xf32>
    %cst_17 = arith.constant dense<0.000000e+00> : vector<16xf32>
    %30 = vector.multi_reduction <add>, %29, %cst_17 [0] : vector<16x16xf32> to vector<16xf32>
    %31 = vector.shape_cast %30 : vector<16xf32> to vector<1x16xf32>
    %32 = vector.broadcast %27 : vector<1x1xf32> to vector<1x16xf32>
    %33 = arith.addf %31, %32 : vector<1x16xf32>
    %cst_18 = arith.constant 0.000000e+00 : f32
    %34 = vector.broadcast %cst_18 : f32 to vector<1x16xf32>
    %35 = arith.cmpf ogt, %33, %34 : vector<1x16xf32>
    %cst_19 = arith.constant 0.00999999977 : f32
    %36 = vector.broadcast %cst_19 : f32 to vector<1x16xf32>
    %37 = arith.mulf %36, %33 : vector<1x16xf32>
    %38 = arith.select %35, %33, %37 : vector<1x16xi1>, vector<1x16xf32>
    %cst_20 = arith.constant 5.000000e-01 : f32
    %39 = vector.broadcast %cst_20 : f32 to vector<1x16xf32>
    %40 = arith.mulf %39, %38 : vector<1x16xf32>
    %41 = math.tanh %40 : vector<1x16xf32>
    %cst_21 = arith.constant 5.000000e-01 : f32
    %42 = vector.broadcast %cst_21 : f32 to vector<1x16xf32>
    %43 = arith.mulf %42, %41 : vector<1x16xf32>
    %cst_22 = arith.constant 5.000000e-01 : f32
    %44 = vector.broadcast %cst_22 : f32 to vector<1x16xf32>
    %45 = arith.addf %44, %43 : vector<1x16xf32>
    %c0_23 = arith.constant 0 : index
    %c0_24 = arith.constant 0 : index
    %46 = vector.load %arg4[%c0_23, %c0_24] : memref<1x16xf32, #tpu.memory_space<vmem>>, vector<1x16xf32>
    tpu.vector_store %arg4[%c0_23, %c0_24], %45 {strides = array<i32>} : memref<1x16xf32, #tpu.memory_space<vmem>>, vector<1x16xf32>,
    return
  }
  func.func @transform_0(%arg0: i32) -> (i32, i32) {
    %c0_i32 = arith.constant 0 : i32
    %c0_i32_0 = arith.constant 0 : i32
    return %arg0, %c0_i32 : i32, i32
  }
  func.func @transform_1(%arg0: i32) -> (i32, i32) {
    %c0_i32 = arith.constant 0 : i32
    %c0_i32_0 = arith.constant 0 : i32
    return %arg0, %c0_i32 : i32, i32
  }
  func.func @transform_2(%arg0: i32) -> (i32, i32) {
    %c0_i32 = arith.constant 0 : i32
    %c0_i32_0 = arith.constant 0 : i32
    %c0_i32_1 = arith.constant 0 : i32
    return %c0_i32, %c0_i32_0 : i32, i32
  }
  func.func @transform_3(%arg0: i32) -> (i32, i32) {
    %c0_i32 = arith.constant 0 : i32
    %c0_i32_0 = arith.constant 0 : i32
    return %c0_i32, %arg0 : i32, i32
  }
}

</mosaic_0001>

<bundles_post_ra>
// kernel: decoder_forward.1
= control target key start
LH: loop header
LB: loop body
LE: loop exit
PB: predicated region body
PF: predicated region fallthrough
CT: control target
= control target key end

     0   :  { %vm23_vm0 = vcmask 64512   ;;  %vm105_vm1 = vcmask 130048   ;;  %s539_s0 = inlined_call_operand.vmem [shape: f32[16,16], index: 0, kind: input, shape index: {}]   ;;  %s540_s1 = inlined_call_operand.vmem [shape: f32[16,8], index: 1, kind: input, shape index: {}]   ;;  %s541_s2 = inlined_call_operand.vmem [shape: f32[80,16], index: 2, kind: input, shape index: {}]   ;;  %s542_s3 = inlined_call_operand.hbm [shape: f32[1,16], index: 3, kind: output, shape index: {}]  }
   0x1   :  { %v21_v0 = vld [vmem:[%s541_s2 + $0x10] sm:$0xff]  ;;  %v17_v1 = vld [vmem:[%s540_s1] sm:$0xff]  ;;  %v18_v2 = vld [vmem:[%s540_s1 + $0x8] sm:$0xff] }
   0x2   :  { %397 = vmatprep.subr.mxu0 %v21_v0  ;;  %399 = vmatprep.mubr.msk.f32.mxu0 %vm23_vm0, %v17_v1  ;;  %v19_v3 = vld [vmem:[%s541_s2] sm:$0xff]  ;;  %v20_v4 = vld [vmem:[%s541_s2 + $0x8] sm:$0xff] }
   0x3   :  { %v15_v5 = vld [vmem:[%s539_s0] sm:$0xff]  ;;  %398 = vmatpush3.msra.mxu0 %v21_v0  ;;  %v416_v6 = vpack.c.bf16 %v20_v4, %v19_v3 }
   0x4   :  { %8 = vsyncpa [#allocation3], 0  ;;  %400 = vmatmul.mubr.msk.f32.vlgmr.msra.gmra.mrb[0].mxu0 %vm23_vm0, %v18_v2  ;;  %v16_v7 = vld [vmem:[%s539_s0 + $0x8] sm:$0xff]  ;;  %v199_v8 = vld [vmem:[%s541_s2 + $0x20] sm:$0xff]  ;;  %v457_v12 = vmov 0   ;;  %vm362_vm7 = vcmask 122880  }
   0x5   :  { %417 = vmatprep.subr.bf16.mxu0 %v416_v6  ;;  %406 = vmatprep.mubr.msk.f32.mxu0 %vm105_vm1, %v15_v5  ;;  %v200_v9 = vld [vmem:[%s541_s2 + $0x28] sm:$0xff]  ;;  %v382_v13 = vld [vmem:[%s541_s2 + $0x18] ss:$0 sm:$0xff]  ;;  %v326_v23 = vld [vmem:[%s541_s2 + $0x40] sm:$0xff] }
   0x6   :  { %419 = vmatpush3.bf16.msra.mxu0 %v416_v6  ;;  %v420_v10 = vpack.c.bf16 %v200_v9, %v199_v8  ;;  %v327_v11 = vld [vmem:[%s541_s2 + $0x48] sm:$0x1]  ;;  %430 = vset.pattern.permute.xlu1 %v457_v12  ;;  %v325_v22 = vld [vmem:[%s541_s2 + $0x38] sm:$0xff]  ;;  %v383_v24 = vld [vmem:[%s541_s2 + $0x30] ss:$0 sm:$0xff]  ;;  %s458_s2 = smov [#allocation2]  }
   0x7   :  { %429 = vset.pattern.permute.xlu0 %v457_v12  ;;  %351 = vperm.xlu1 %430, %v327_v11   ;;  %s370_s11 = sshll.u32 %s458_s2, 4  ;;  %s371_s11 = int_to_ptr.vmem [resolvable:$true] %s370_s11 }
   0x8   :  { %421 = vmatprep.subr.bf16.mxu1 %v420_v10  ;;  %330 = vperm.xlu0 %429, %v325_v22   ;;  %s433_s12 = scalar_lea.vmem %s371_s11, 16  ;;  %s437_s13 = scalar_lea.vmem %s371_s11, 32 }
   0x9   :  { %423 = vmatpush3.bf16.msra.mxu1 %v420_v10  ;;  %p434_p0 = scmp.ne.s32.totalorder %s371_s11, %s433_s12  ;;  %p438_p1 = scmp.lt.s32.totalorder %s371_s11, %s371_s11 }
   0xa   :  { %p439_p2 = scmp.lt.s32.totalorder %s437_s13, %s433_s12 }
   0xc   :  { %407 = vmatmul.mubr.msk.f32.vlgmr.msra.gmra.mrb[0].mxu0 %vm105_vm1, %v16_v7  ;;  %335 = vperm.xlu0 %429, %v326_v23   ;;  %p440_p3 = por %p439_p2, %p438_p1 }
   0xe   :  { %p441_p4 = pnand %p440_p3, %p434_p0 }
  0x86   :  { %v352_v33 = vpop.permute.xlu1 %351 }
  0x87   :  { %v331_v34 = vpop.permute.xlu0 %330 }
  0x8b   :  { %v336_v37 = vpop.permute.xlu0 %335 }
  0xdf   :  { %v408_v14 = vpop.f32.mrb[0].mxu0 }
  0xe0   :  { %v192_v15 = vadd.f32 %v408_v14, %v382_v13  ;;  %v178_v16 = vpop.f32.mrb[1].mxu0 }
  0xe1   :  { %v191_v17 = vadd.f32 %v382_v13, %v178_v16 }
  0xe2   :  { %v196_v18 = vmul.f32 0.01, %v192_v15  ;;  %vm194_vm2 = vcmp.gt.f32.partialorder %v192_v15, 0.0 }
  0xe3   :  { %vm193_vm3 = vcmp.gt.f32.partialorder %v191_v17, 0.0  ;;  %v195_v19 = vmul.f32 0.01, %v191_v17 }
  0xe4   :  { %v198_v21 = vsel %vm194_vm2, %v192_v15, %v196_v18 }
  0xe5   :  { %v197_v20 = vsel %vm193_vm3, %v191_v17, %v195_v19 }
  0xe6   :  { %413 = vmatprep.mubr.msk.f32.mxu1 %vm105_vm1, %v197_v20 }
  0xe7   :  { %414 = vmatmul.mubr.msk.f32.vlgmr.msra.gmra.mrb[0].mxu1 %vm105_vm1, %v198_v21 }
 0x1ba   :  { %v415_v25 = vpop.f32.mrb[0].mxu1 }
 0x1bb   :  { %v278_v26 = vpop.f32.mrb[1].mxu1  ;;  %v284_v27 = vadd.f32 %v415_v25, %v383_v24 }
 0x1bc   :  { %v279_v28 = vadd.f32 %v383_v24, %v278_v26 }
 0x1bd   :  { %v290_v30 = vmul.f32 0.01, %v284_v27  ;;  %vm288_vm5 = vcmp.gt.f32.partialorder %v284_v27, 0.0 }
 0x1be   :  { %v289_v29 = vmul.f32 0.01, %v279_v28  ;;  %vm287_vm4 = vcmp.gt.f32.partialorder %v279_v28, 0.0 }
 0x1bf   :  { %v292_v32 = vsel %vm288_vm5, %v284_v27, %v290_v30 }
 0x1c0   :  { %v291_v31 = vsel %vm287_vm4, %v279_v28, %v289_v29 }
 0x1c1   :  { %293 = vxpose.xlu1.b32.start [1/2] (short) (narrow) %v291_v31, 16 }
 0x1c5   :  { %294 = vxpose.xlu1.b32.end [2/2] (short) (narrow) %v292_v32, 16 }
 0x241   :  { %v309_v35 = vpop.trf.xlu1 }
 0x242   :  { %v338_v36 = vmul.f32 %v331_v34, %v309_v35 }
 0x244   :  { %v340_v40 = vsel %vm105_vm1, %v338_v36, 0.0 }
 0x245   :  { %v310_v38 = vpop.trf.xlu1 }
 0x246   :  { %v339_v39 = vmul.f32 %v336_v37, %v310_v38 }
 0x248   :  { %v341_v41 = vsel %vm105_vm1, %v339_v39, 0.0 }
 0x249   :  { %v342_v42 = vadd.f32 %v341_v41, %v340_v40 }
 0x24b   :  { %v343_v43 = vrot.slane %v342_v42, 4 }
 0x24d   :  { %v344_v44 = vadd.f32 %v343_v43, %v342_v42 }
 0x24f   :  { %v345_v45 = vrot.slane %v344_v44, 2 }
 0x251   :  { %v346_v46 = vadd.f32 %v345_v45, %v344_v44 }
 0x253   :  { %v347_v47 = vrot.slane %v346_v46, 1 }
 0x255   :  { %v348_v48 = vadd.f32 %v347_v47, %v346_v46 }
 0x257   :  { %v354_v49 = vadd.f32 %v352_v33, %v348_v48 }
 0x259   :  { %vm355_vm6 = vcmp.gt.f32.partialorder %v354_v49, 0.0  ;;  %v356_v50 = vmul.f32 0.01, %v354_v49 }
 0x25b   :  { %v357_v51 = vsel %vm355_vm6, %v354_v49, %v356_v50 }
 0x25c   :  { %v358_v52 = vmul.f32 0.5, %v357_v51 }
 0x25e   :  { %431 = vtanh.f32 %v358_v52 }
 0x268   :  { %v432_v53 = vpop.eup %431 }
 0x269   :  { %v360_v54 = vmul.f32 0.5, %v432_v53 }
 0x26b   :  { %v361_v55 = vadd.f32 0.5, %v360_v54 }
 0x26d   :  { %363 = vst.msk [vmem:[#allocation2] sm:$0x1] %vm362_vm7, %v361_v55 }
 0x26e   :  { %444 = shalt.err (!%p441_p4)
}
 0x26f   :  { %s445_s16 = scalar_lea.hbm %s542_s3, 16 }
 0x270   :  { %p446_p5 = scmp.ne.s32.totalorder %s542_s3, %s445_s16  ;;  %p449_p6 = scmp.lt.u32.totalorder %s445_s16, %s542_s3 }
 0x272   :  { %p451_p7 = pnand %p449_p6, %p446_p5 }
 0x274   :  { %454 = shalt.err (!%p451_p7)
}
 0x275   :  { %373 = dma.vmem_to_hbm [thread:$0]  %s371_s11, 16, %s542_s3, [#allocation3]  }
 0x276   :  { %455 = dma.done.wait [#allocation3], 16  }
 0x277   :  { %456 = vsyncadd [#allocation3], 4294967280 }
 0x278   :  { %377 = vsyncpa [#allocation3], 1 }

</bundles_post_ra>
